<compile_context>
chip_gen: v7x
topology: tpu7x:2x2x1
jax: 0.10.0
libtpu: 0.0.40
codegen_flags: <defaults>
</compile_context>

<pallas_src>
import functools

import jax
import jax.numpy as jnp
from jax.experimental import pallas as pl
from jax.experimental.pallas import tpu as pltpu


# --------------------------------------------------------------------------
# Pallas kernels: (im2col-matmul, BN-scale prefolded) + bias [+ residual] [+ ReLU]
# --------------------------------------------------------------------------
def _matmul_bias_kernel(p_ref, w_ref, b_ref, o_ref, *, relu):
    acc = jnp.dot(p_ref[...], w_ref[...], preferred_element_type=jnp.float32)
    y = acc + b_ref[...]
    if relu:
        y = jnp.maximum(y, 0.0)
    o_ref[...] = y.astype(o_ref.dtype)


def _matmul_bias_res_kernel(p_ref, w_ref, b_ref, r_ref, o_ref, *, relu):
    acc = jnp.dot(p_ref[...], w_ref[...], preferred_element_type=jnp.float32)
    y = acc + b_ref[...] + r_ref[...].astype(jnp.float32)  # residual upcast in-kernel
    if relu:
        y = jnp.maximum(y, 0.0)
    o_ref[...] = y.astype(o_ref.dtype)


def _round_up(x, m):
    return ((x + m - 1) // m) * m


def _choose_tile_m(M, K, C_pad, budget_bytes=8 << 20):
    """Largest row tile (multiple of 8) whose pipelined footprint fits the budget."""
    cap = _round_up(M, 8)
    tile = 8
    for cand in (2048, 1024, 512, 256, 128, 64, 32, 16, 8):
        if cand > cap:
            continue
        # 2x buffering of: bf16 patches + bf16 residual + f32 output tile,
        # plus one f32 accumulator-sized temporary.
        step = 2 * cand * (K * 2 + C_pad * 2 + C_pad * 4) + cand * C_pad * 4
        if step <= budget_bytes:
            tile = cand
            break
    return tile


def conv_bn_pallas(patches, w_mat, scale, bias, residual=None, relu=True,
                   out_dtype=jnp.bfloat16, compute_dtype=jnp.bfloat16):
    """patches: (M, K) im2col rows, w_mat: (K, Cout).  Returns (M, Cout) out_dtype.

    BN scale is folded into w_mat here; the kernel does matmul + bias
    [+ residual] [+ ReLU].
    """
    M, K = patches.shape
    Kw, Cout = w_mat.shape
    assert K == Kw

    # Fold BN scale into the weights (once, wrapper-side).
    w_scaled = w_mat.astype(jnp.float32) * scale.astype(jnp.float32)[None, :]

    # Lane-dense output padding only; K stays at its true width (blocks cover
    # the full K extent, which satisfies the (8,128) rule).
    C_pad = _round_up(Cout, 128)
    tile_m = _choose_tile_m(M, K, C_pad)
    M_pad = _round_up(M, tile_m)
    grid_m = M_pad // tile_m

    comp_isz = jnp.dtype(compute_dtype).itemsize
    out_isz = jnp.dtype(out_dtype).itemsize

    p = patches.astype(compute_dtype)
    if M_pad != M:
        p = jnp.pad(p, ((0, M_pad - M), (0, 0)))
    w = jnp.pad(w_scaled, ((0, 0), (0, C_pad - Cout))).astype(compute_dtype)
    b = jnp.pad(bias.astype(jnp.float32).reshape(1, Cout),
                ((0, 0), (0, C_pad - Cout)))

    p_spec = pl.BlockSpec((tile_m, K), lambda i: (i, 0))
    w_spec = pl.BlockSpec((K, C_pad), lambda i: (0, 0))        # VMEM-resident
    b_spec = pl.BlockSpec((1, C_pad), lambda i: (0, 0))        # VMEM-resident
    o_spec = pl.BlockSpec((tile_m, C_pad), lambda i: (i, 0))
    out_shape = jax.ShapeDtypeStruct((M_pad, C_pad), out_dtype)

    res_bytes = 0
    res_isz = 0
    if residual is None:
        kernel = functools.partial(_matmul_bias_kernel, relu=relu)
        in_specs = [p_spec, w_spec, b_spec]
        args = (p, w, b)
    else:
        # Keep residual in its native dtype; it is upcast inside the kernel.
        res_isz = jnp.dtype(residual.dtype).itemsize
        r = jnp.pad(residual, ((0, M_pad - M), (0, C_pad - Cout)))
        kernel = functools.partial(_matmul_bias_res_kernel, relu=relu)
        r_spec = pl.BlockSpec((tile_m, C_pad), lambda i: (i, 0))
        in_specs = [p_spec, w_spec, b_spec, r_spec]
        args = (p, w, b, r)
        res_bytes = M_pad * C_pad * res_isz

    # VMEM budget: resident weight/bias panel + 2x pipelined per-step tiles
    # (+ f32 accumulator headroom).
    step_bytes = (2 * tile_m * (K * comp_isz + C_pad * (res_isz + out_isz))
                  + tile_m * C_pad * 4)
    resident_bytes = K * C_pad * comp_isz + C_pad * 4
    vmem_limit = int(min(64 << 20, max(2 * (step_bytes + resident_bytes), 16 << 20)))

    cost = pl.CostEstimate(
        flops=2 * M_pad * K * C_pad,
        transcendentals=0,
        bytes_accessed=(M_pad * K * comp_isz + K * C_pad * comp_isz
                        + C_pad * 4 + M_pad * C_pad * out_isz + res_bytes))

    out = pl.pallas_call(
        kernel,
        grid=(grid_m,),
        in_specs=in_specs,
        out_specs=o_spec,
        out_shape=out_shape,
        compiler_params=pltpu.CompilerParams(
            dimension_semantics=("parallel",),
            vmem_limit_bytes=vmem_limit),
        cost_estimate=cost,
    )(*args)

    return out[:M, :Cout]


# --------------------------------------------------------------------------
# Glue: im2col, BN folding, weight re-layout
# --------------------------------------------------------------------------
def im2col_nhwc(x_nhwc, ksize, stride, pad):
    """x: (N, H, W, C) -> patches (N*Ho*Wo, ksize*ksize*C), plus (N, Ho, Wo)."""
    x_p = jnp.pad(x_nhwc, ((0, 0), (pad, pad), (pad, pad), (0, 0)))
    N, Hp, Wp, C = x_p.shape
    Ho = (Hp - ksize) // stride + 1
    Wo = (Wp - ksize) // stride + 1
    taps = []
    for ky in range(ksize):
        for kx in range(ksize):
            taps.append(
                x_p[:, ky:ky + (Ho - 1) * stride + 1:stride,
                      kx:kx + (Wo - 1) * stride + 1:stride, :])
    patches = jnp.stack(taps, axis=3)                       # (N, Ho, Wo, k*k, C)
    patches = patches.reshape(N * Ho * Wo, ksize * ksize * C)
    return patches, (N, Ho, Wo)


def fold_bn(gamma, beta, running_mean, running_var, eps=1e-5):
    scale = gamma / jnp.sqrt(running_var + eps)
    bias = beta - running_mean * scale
    return scale, bias


def conv_weight_to_matmul(w_oihw):
    """PyTorch (Cout, Cin, kH, kW) -> (kH*kW*Cin, Cout) matching im2col order."""
    cout, cin, kh, kw = w_oihw.shape
    return jnp.transpose(w_oihw, (2, 3, 1, 0)).reshape(kh * kw * cin, cout)


# --------------------------------------------------------------------------
# DefaultBasicBlock in JAX/Pallas
# --------------------------------------------------------------------------
class DefaultBasicBlockPallas:
    expansion = 1

    def __init__(self, inplanes, planes, block_expansion=1, stride=1,
                 downsample=False, key=None):
        if key is None:
            key = jax.random.PRNGKey(0)
        ks = jax.random.split(key, 12)
        self.stride = stride
        self.downsample = downsample
        self.inplanes = inplanes
        self.planes = planes
        out_ds = planes * block_expansion

        def conv_init(k, cout, cin, ksz):
            bound = 1.0 / (cin * ksz * ksz) ** 0.5
            return jax.random.uniform(k, (cout, cin, ksz, ksz), jnp.float32,
                                      -bound, bound)

        def bn_init(k, c):
            k1, k2, k3, k4 = jax.random.split(k, 4)
            gamma = jax.random.uniform(k1, (c,), jnp.float32, 0.5, 1.5)
            beta = 0.1 * jax.random.normal(k2, (c,), jnp.float32)
            rmean = 0.1 * jax.random.normal(k3, (c,), jnp.float32)
            rvar = jax.random.uniform(k4, (c,), jnp.float32, 0.5, 1.5)
            return gamma, beta, rmean, rvar

        self.w1 = conv_init(ks[0], planes, inplanes, 3)
        self.bn1 = bn_init(ks[1], planes)
        self.w2 = conv_init(ks[2], planes, planes, 3)
        self.bn2 = bn_init(ks[3], planes)
        if downsample:
            self.wd = conv_init(ks[4], out_ds, inplanes, 1)
            self.bnd = bn_init(ks[5], out_ds)

    def __call__(self, x_nchw):
        x = jnp.transpose(x_nchw, (0, 2, 3, 1))            # -> NHWC
        in_dtype = x.dtype
        x_bf = x.astype(jnp.bfloat16)                      # bf16 im2col stream

        # conv1 (3x3, stride) + BN1 + ReLU -> bf16 intermediate
        p1, (N, Ho, Wo) = im2col_nhwc(x_bf, 3, self.stride, 1)
        s1, b1 = fold_bn(*self.bn1)
        out1 = conv_bn_pallas(p1, conv_weight_to_matmul(self.w1), s1, b1,
                              relu=True, out_dtype=jnp.bfloat16)
        out1_nhwc = out1.reshape(N, Ho, Wo, self.planes)

        # residual path
        if self.downsample:
            pd, _ = im2col_nhwc(x_bf, 1, self.stride, 0)
            sd, bd = fold_bn(*self.bnd)
            residual = conv_bn_pallas(pd, conv_weight_to_matmul(self.wd), sd, bd,
                                      relu=False, out_dtype=jnp.bfloat16)
        else:
            assert self.stride == 1 and self.inplanes == self.planes, (
                "identity residual requires stride==1 and inplanes==planes")
            residual = x.reshape(N * Ho * Wo, self.inplanes)  # native dtype

        # conv2 (3x3, stride 1) + BN2 + residual add + ReLU (fused in kernel)
        p2, _ = im2col_nhwc(out1_nhwc, 3, 1, 1)
        s2, b2 = fold_bn(*self.bn2)
        out2 = conv_bn_pallas(p2, conv_weight_to_matmul(self.w2), s2, b2,
                              residual=residual, relu=True, out_dtype=in_dtype)

        out = out2.reshape(N, Ho, Wo, self.planes)
        return jnp.transpose(out, (0, 3, 1, 2))            # -> NCHW


# --------------------------------------------------------------------------
# Pure-JAX f32 reference (lax conv) for numerical verification
# --------------------------------------------------------------------------
def reference_forward(block, x_nchw):
    def conv(x, w, stride, pad):
        return jax.lax.conv_general_dilated(
            x, w, (stride, stride), [(pad, pad), (pad, pad)],
            dimension_numbers=("NCHW", "OIHW", "NCHW"))

    def bn(x, params, eps=1e-5):
        gamma, beta, mean, var = params
        s = gamma / jnp.sqrt(var + eps)
        return x * s[None, :, None, None] + (beta - mean * s)[None, :, None, None]

    out = jax.nn.relu(bn(conv(x_nchw, block.w1, block.stride, 1), block.bn1))
    out = bn(conv(out, block.w2, 1, 1), block.bn2)
    if block.downsample:
        residual = bn(conv(x_nchw, block.wd, block.stride, 0), block.bnd)
    else:
        residual = x_nchw
    return jax.nn.relu(out + residual)


if __name__ == "__main__":
    key = jax.random.PRNGKey(0)
    k_x, k_params = jax.random.split(key)

    # small shapes: batch=2, inplanes=4, planes=8, spatial=16x16, stride=2,
    # downsample with block_expansion=1 so residual shapes match.
    x = jax.random.normal(k_x, (2, 4, 16, 16), jnp.float32)

    block = DefaultBasicBlockPallas(inplanes=4, planes=8, block_expansion=1,
                                    stride=2, downsample=True, key=k_params)

    fwd = jax.jit(lambda a: block(a))
    out = jax.block_until_ready(fwd(x))

    ref = jax.block_until_ready(reference_forward(block, x))
    assert out.shape == ref.shape == (2, 8, 8, 8), out.shape
    # bf16 MXU operands (f32 accumulate) -> relaxed tolerance vs f32 reference.
    assert jnp.allclose(out, ref, atol=5e-2, rtol=5e-2), float(
        jnp.max(jnp.abs(out - ref)))

    print("KERNEL_OK")
</pallas_src>

<mosaic_0001>
module attributes {stable_mosaic.version = 11 : i64} {
  func.func @_matmul_bias_kernel(%arg0: i32, %arg1: memref<128x4xbf16, #tpu.memory_space<vmem>>, %arg2: memref<4x128xbf16, #tpu.memory_space<vmem>>, %arg3: memref<1x128xf32, #tpu.memory_space<vmem>>, %arg4: memref<128x128xbf16, #tpu.memory_space<vmem>>) attributes {dimension_semantics = [#tpu.dimension_semantics<parallel>], iteration_bounds = array<i64: 1>, scalar_prefetch = 0 : i64, scratch_operands = 0 : i64, tpu.core_type = #tpu.core_type<tc>, window_params = [{transform_indices = @transform_0, window_bounds = array<i64: 128, 4>}, {pipeline_mode = #tpu.pipeline_mode<synchronous>, transform_indices = @transform_1, window_bounds = array<i64: 4, 128>}, {pipeline_mode = #tpu.pipeline_mode<synchronous>, transform_indices = @transform_2, window_bounds = array<i64: 1, 128>}, {transform_indices = @transform_3, window_bounds = array<i64: 128, 128>}]} {
    %c0 = arith.constant 0 : index
    %c0_0 = arith.constant 0 : index
    %0 = vector.load %arg1[%c0, %c0_0] : memref<128x4xbf16, #tpu.memory_space<vmem>>, vector<128x4xbf16>
    %c0_1 = arith.constant 0 : index
    %c0_2 = arith.constant 0 : index
    %1 = vector.load %arg2[%c0_1, %c0_2] : memref<4x128xbf16, #tpu.memory_space<vmem>>, vector<4x128xbf16>
    %cst = arith.constant dense<0.000000e+00> : vector<128x128xf32>
    %2 = tpu.matmul %0, %1, %cst {dimension_numbers = #tpu.dot_dimension_numbers<[1], [0], [0], [1], [0, 0, 1, 1], [], []>} : vector<128x4xbf16>, vector<4x128xbf16>, vector<128x128xf32> -> vector<128x128xf32>
    %c0_3 = arith.constant 0 : index
    %c0_4 = arith.constant 0 : index
    %3 = vector.load %arg3[%c0_3, %c0_4] : memref<1x128xf32, #tpu.memory_space<vmem>>, vector<1x128xf32>
    %4 = vector.broadcast %3 : vector<1x128xf32> to vector<128x128xf32>
    %5 = arith.addf %2, %4 : vector<128x128xf32>
    %6 = arith.truncf %5 : vector<128x128xf32> to vector<128x128xbf16>
    %c0_5 = arith.constant 0 : index
    %c0_6 = arith.constant 0 : index
    %7 = vector.load %arg4[%c0_5, %c0_6] : memref<128x128xbf16, #tpu.memory_space<vmem>>, vector<128x128xbf16>
    tpu.vector_store %arg4[%c0_5, %c0_6], %6 {strides = array<i32>} : memref<128x128xbf16, #tpu.memory_space<vmem>>, vector<128x128xbf16>,
    return
  }
  func.func @transform_0(%arg0: i32) -> (i32, i32) {
    %c0_i32 = arith.constant 0 : i32
    %c0_i32_0 = arith.constant 0 : i32
    return %arg0, %c0_i32 : i32, i32
  }
  func.func @transform_1(%arg0: i32) -> (i32, i32) {
    %c0_i32 = arith.constant 0 : i32
    %c0_i32_0 = arith.constant 0 : i32
    %c0_i32_1 = arith.constant 0 : i32
    return %c0_i32, %c0_i32_0 : i32, i32
  }
  func.func @transform_2(%arg0: i32) -> (i32, i32) {
    %c0_i32 = arith.constant 0 : i32
    %c0_i32_0 = arith.constant 0 : i32
    %c0_i32_1 = arith.constant 0 : i32
    return %c0_i32, %c0_i32_0 : i32, i32
  }
  func.func @transform_3(%arg0: i32) -> (i32, i32) {
    %c0_i32 = arith.constant 0 : i32
    %c0_i32_0 = arith.constant 0 : i32
    return %arg0, %c0_i32 : i32, i32
  }
}

module attributes {stable_mosaic.version = 11 : i64} {
  func.func @_matmul_bias_kernel(%arg0: i32, %arg1: memref<128x36xbf16, #tpu.memory_space<vmem>>, %arg2: memref<36x128xbf16, #tpu.memory_space<vmem>>, %arg3: memref<1x128xf32, #tpu.memory_space<vmem>>, %arg4: memref<128x128xbf16, #tpu.memory_space<vmem>>) attributes {dimension_semantics = [#tpu.dimension_semantics<parallel>], iteration_bounds = array<i64: 1>, scalar_prefetch = 0 : i64, scratch_operands = 0 : i64, tpu.core_type = #tpu.core_type<tc>, window_params = [{transform_indices = @transform_0, window_bounds = array<i64: 128, 36>}, {pipeline_mode = #tpu.pipeline_mode<synchronous>, transform_indices = @transform_1, window_bounds = array<i64: 36, 128>}, {pipeline_mode = #tpu.pipeline_mode<synchronous>, transform_indices = @transform_2, window_bounds = array<i64: 1, 128>}, {transform_indices = @transform_3, window_bounds = array<i64: 128, 128>}]} {
    %c0 = arith.constant 0 : index
    %c0_0 = arith.constant 0 : index
    %0 = vector.load %arg1[%c0, %c0_0] : memref<128x36xbf16, #tpu.memory_space<vmem>>, vector<128x36xbf16>
    %c0_1 = arith.constant 0 : index
    %c0_2 = arith.constant 0 : index
    %1 = vector.load %arg2[%c0_1, %c0_2] : memref<36x128xbf16, #tpu.memory_space<vmem>>, vector<36x128xbf16>
    %cst = arith.constant dense<0.000000e+00> : vector<128x128xf32>
    %2 = tpu.matmul %0, %1, %cst {dimension_numbers = #tpu.dot_dimension_numbers<[1], [0], [0], [1], [0, 0, 1, 1], [], []>} : vector<128x36xbf16>, vector<36x128xbf16>, vector<128x128xf32> -> vector<128x128xf32>
    %c0_3 = arith.constant 0 : index
    %c0_4 = arith.constant 0 : index
    %3 = vector.load %arg3[%c0_3, %c0_4] : memref<1x128xf32, #tpu.memory_space<vmem>>, vector<1x128xf32>
    %4 = vector.broadcast %3 : vector<1x128xf32> to vector<128x128xf32>
    %5 = arith.addf %2, %4 : vector<128x128xf32>
    %cst_5 = arith.constant 0.000000e+00 : f32
    %6 = vector.broadcast %cst_5 : f32 to vector<128x128xf32>
    %7 = arith.maximumf %5, %6 : vector<128x128xf32>
    %8 = arith.truncf %7 : vector<128x128xf32> to vector<128x128xbf16>
    %c0_6 = arith.constant 0 : index
    %c0_7 = arith.constant 0 : index
    %9 = vector.load %arg4[%c0_6, %c0_7] : memref<128x128xbf16, #tpu.memory_space<vmem>>, vector<128x128xbf16>
    tpu.vector_store %arg4[%c0_6, %c0_7], %8 {strides = array<i32>} : memref<128x128xbf16, #tpu.memory_space<vmem>>, vector<128x128xbf16>,
    return
  }
  func.func @transform_0(%arg0: i32) -> (i32, i32) {
    %c0_i32 = arith.constant 0 : i32
    %c0_i32_0 = arith.constant 0 : i32
    return %arg0, %c0_i32 : i32, i32
  }
  func.func @transform_1(%arg0: i32) -> (i32, i32) {
    %c0_i32 = arith.constant 0 : i32
    %c0_i32_0 = arith.constant 0 : i32
    %c0_i32_1 = arith.constant 0 : i32
    return %c0_i32, %c0_i32_0 : i32, i32
  }
  func.func @transform_2(%arg0: i32) -> (i32, i32) {
    %c0_i32 = arith.constant 0 : i32
    %c0_i32_0 = arith.constant 0 : i32
    %c0_i32_1 = arith.constant 0 : i32
    return %c0_i32, %c0_i32_0 : i32, i32
  }
  func.func @transform_3(%arg0: i32) -> (i32, i32) {
    %c0_i32 = arith.constant 0 : i32
    %c0_i32_0 = arith.constant 0 : i32
    return %arg0, %c0_i32 : i32, i32
  }
}

module attributes {stable_mosaic.version = 11 : i64} {
  func.func @_matmul_bias_res_kernel(%arg0: i32, %arg1: memref<128x72xbf16, #tpu.memory_space<vmem>>, %arg2: memref<72x128xbf16, #tpu.memory_space<vmem>>, %arg3: memref<1x128xf32, #tpu.memory_space<vmem>>, %arg4: memref<128x128xbf16, #tpu.memory_space<vmem>>, %arg5: memref<128x128xf32, #tpu.memory_space<vmem>>) attributes {dimension_semantics = [#tpu.dimension_semantics<parallel>], iteration_bounds = array<i64: 1>, scalar_prefetch = 0 : i64, scratch_operands = 0 : i64, tpu.core_type = #tpu.core_type<tc>, window_params = [{transform_indices = @transform_0, window_bounds = array<i64: 128, 72>}, {pipeline_mode = #tpu.pipeline_mode<synchronous>, transform_indices = @transform_1, window_bounds = array<i64: 72, 128>}, {pipeline_mode = #tpu.pipeline_mode<synchronous>, transform_indices = @transform_2, window_bounds = array<i64: 1, 128>}, {transform_indices = @transform_3, window_bounds = array<i64: 128, 128>}, {transform_indices = @transform_4, window_bounds = array<i64: 128, 128>}]} {
    %c0 = arith.constant 0 : index
    %c0_0 = arith.constant 0 : index
    %0 = vector.load %arg1[%c0, %c0_0] : memref<128x72xbf16, #tpu.memory_space<vmem>>, vector<128x72xbf16>
    %c0_1 = arith.constant 0 : index
    %c0_2 = arith.constant 0 : index
    %1 = vector.load %arg2[%c0_1, %c0_2] : memref<72x128xbf16, #tpu.memory_space<vmem>>, vector<72x128xbf16>
    %cst = arith.constant dense<0.000000e+00> : vector<128x128xf32>
    %2 = tpu.matmul %0, %1, %cst {dimension_numbers = #tpu.dot_dimension_numbers<[1], [0], [0], [1], [0, 0, 1, 1], [], []>} : vector<128x72xbf16>, vector<72x128xbf16>, vector<128x128xf32> -> vector<128x128xf32>
    %c0_3 = arith.constant 0 : index
    %c0_4 = arith.constant 0 : index
    %3 = vector.load %arg3[%c0_3, %c0_4] : memref<1x128xf32, #tpu.memory_space<vmem>>, vector<1x128xf32>
    %4 = vector.broadcast %3 : vector<1x128xf32> to vector<128x128xf32>
    %5 = arith.addf %2, %4 : vector<128x128xf32>
    %c0_5 = arith.constant 0 : index
    %c0_6 = arith.constant 0 : index
    %6 = vector.load %arg4[%c0_5, %c0_6] : memref<128x128xbf16, #tpu.memory_space<vmem>>, vector<128x128xbf16>
    %7 = arith.extf %6 : vector<128x128xbf16> to vector<128x128xf32>
    %8 = arith.addf %5, %7 : vector<128x128xf32>
    %cst_7 = arith.constant 0.000000e+00 : f32
    %9 = vector.broadcast %cst_7 : f32 to vector<128x128xf32>
    %10 = arith.maximumf %8, %9 : vector<128x128xf32>
    %c0_8 = arith.constant 0 : index
    %c0_9 = arith.constant 0 : index
    %11 = vector.load %arg5[%c0_8, %c0_9] : memref<128x128xf32, #tpu.memory_space<vmem>>, vector<128x128xf32>
    tpu.vector_store %arg5[%c0_8, %c0_9], %10 {strides = array<i32>} : memref<128x128xf32, #tpu.memory_space<vmem>>, vector<128x128xf32>,
    return
  }
  func.func @transform_0(%arg0: i32) -> (i32, i32) {
    %c0_i32 = arith.constant 0 : i32
    %c0_i32_0 = arith.constant 0 : i32
    return %arg0, %c0_i32 : i32, i32
  }
  func.func @transform_1(%arg0: i32) -> (i32, i32) {
    %c0_i32 = arith.constant 0 : i32
    %c0_i32_0 = arith.constant 0 : i32
    %c0_i32_1 = arith.constant 0 : i32
    return %c0_i32, %c0_i32_0 : i32, i32
  }
  func.func @transform_2(%arg0: i32) -> (i32, i32) {
    %c0_i32 = arith.constant 0 : i32
    %c0_i32_0 = arith.constant 0 : i32
    %c0_i32_1 = arith.constant 0 : i32
    return %c0_i32, %c0_i32_0 : i32, i32
  }
  func.func @transform_3(%arg0: i32) -> (i32, i32) {
    %c0_i32 = arith.constant 0 : i32
    %c0_i32_0 = arith.constant 0 : i32
    return %arg0, %c0_i32 : i32, i32
  }
  func.func @transform_4(%arg0: i32) -> (i32, i32) {
    %c0_i32 = arith.constant 0 : i32
    %c0_i32_0 = arith.constant 0 : i32
    return %arg0, %c0_i32 : i32, i32
  }
}

</mosaic_0001>

<bundles_post_ra>
// kernel: _lambda_.4
= control target key start
LH: loop header
LB: loop body
LE: loop exit
PB: predicated region body
PF: predicated region fallthrough
CT: control target
= control target key end

     0   :  { %vm104_vm0 = vcmask 1041408   ;;  %vm79_vm1 = vcmask 31744   ;;  %s506_s1 = inlined_call_operand.vmem [shape: bf16[4,128], index: 1, kind: input, shape index: {}]   ;;  %s507_s0 = inlined_call_operand.vmem [shape: bf16[128,4], index: 0, kind: input, shape index: {}]   ;;  %s508_s2 = inlined_call_operand.vmem [shape: f32[1,128], index: 2, kind: input, shape index: {}]   ;;  %s509_s3 = inlined_call_operand.vmem [shape: bf16[128,128], index: 3, kind: output, shape index: {}]  }
   0x1   :  { %v31_v0 = vld [vmem:[%s506_s1] sm:$0x3]  ;;  %v418_v4 = vld [vmem:[%s507_s0 + $0x8] sm:$0xff]   ;;  %v420_v6 = vld [vmem:[%s507_s0 + $0x10] sm:$0xff]  }
   0x2   :  { %414 = vmatprep.subr.msk.bf16.mxu0 %vm104_vm0, %v31_v0  ;;  %415 = vmatprep.subr.msk.bf16.mxu1 %vm104_vm0, %v31_v0  ;;  %v106_v1 = vsel %vm104_vm0, %v31_v0, 0  ;;  %v416_v2 = vld [vmem:[%s507_s0] sm:$0xff]   ;;  %v419_v5 = vld [vmem:[%s507_s0 + $0x28] sm:$0xff]   ;;  %v421_v7 = vld [vmem:[%s507_s0 + $0x30] sm:$0xff]  }
   0x3   :  { %395 = vmatpush3.bf16.msra.mxu0 %v106_v1  ;;  %413 = vmatpush3.bf16.msra.mxu1 %v106_v1  ;;  %v417_v3 = vld [vmem:[%s507_s0 + $0x20] sm:$0xff]   ;;  %v422_v8 = vld [vmem:[%s507_s0 + $0x18] sm:$0xff]  }
   0x4   :  { %396 = vmatprep.mubr.msk.bf16.mxu0 %vm79_vm1, %v416_v2  ;;  %404 = vmatprep.mubr.msk.bf16.mxu1 %vm79_vm1, %v417_v3  ;;  %v423_v9 = vld [vmem:[%s507_s0 + $0x38] sm:$0xff]   ;;  %v289_v11 = vld [vmem:[%s508_s2] ss:$0 sm:$0xff] }
   0x6   :  { %397 = vmatmul.mubr.msk.bf16.vlgmr.msra.gmra.mrb[0].mxu0 %vm79_vm1, %v418_v4  ;;  %405 = vmatmul.mubr.msk.bf16.vlgmr.msra.gmra.mrb[0].mxu1 %vm79_vm1, %v419_v5 }
   0x7   :  { %400 = vmatprep.mubr.msk.bf16.mxu0 %vm79_vm1, %v420_v6  ;;  %408 = vmatprep.mubr.msk.bf16.mxu1 %vm79_vm1, %v421_v7 }
   0xe   :  { %401 = vmatmul.mubr.msk.bf16.gmra.mrb[4].mxu0 %vm79_vm1, %v422_v8  ;;  %409 = vmatmul.mubr.msk.bf16.gmra.mrb[4].mxu1 %vm79_vm1, %v423_v9 }
  0xd9   :  { %v398_v10 = vpop.f32.mrb[0].mxu0  ;;  %v406_v12 = vpop.f32.mrb[0].mxu1 }
  0xda   :  { %v142_v13 = vpop.f32.mrb[1].mxu0  ;;  %v174_v14 = vpop.f32.mrb[1].mxu1  ;;  %v151_v16 = vadd.f32 %v398_v10, %v289_v11  ;;  %v183_v20 = vadd.f32 %v406_v12, %v289_v11 }
  0xdb   :  { %v399_v15 = vpop.f32.mrb[2].mxu0  ;;  %v407_v18 = vpop.f32.mrb[2].mxu1  ;;  %v143_v21 = vadd.f32 %v289_v11, %v142_v13  ;;  %v175_v25 = vadd.f32 %v289_v11, %v174_v14 }
  0xdc   :  { %v154_v17 = vadd.f32 %v399_v15, %v289_v11  ;;  %v145_v19 = vpop.f32.mrb[3].mxu0  ;;  %v186_v22 = vadd.f32 %v407_v18, %v289_v11  ;;  %v177_v24 = vpop.f32.mrb[3].mxu1 }
  0xdd   :  { %v146_v23 = vadd.f32 %v289_v11, %v145_v19  ;;  %v178_v27 = vadd.f32 %v289_v11, %v177_v24 }
  0xde   :  { %v346_v26 = vpack.c.bf16 %v154_v17, %v151_v16  ;;  %v366_v28 = vpack.c.bf16 %v186_v22, %v183_v20 }
  0xdf   :  { %v341_v29 = vpack.c.bf16 %v146_v23, %v143_v21  ;;  %v361_v30 = vpack.c.bf16 %v178_v27, %v175_v25 }
  0xe0   :  { %378 = vst [vmem:[%s509_s3 + $0x8] sm:$0xff] %v346_v26   ;;  %382 = vst [vmem:[%s509_s3 + $0x28] sm:$0xff] %v366_v28  }
  0xe1   :  { %342 = vst [vmem:[%s509_s3] sm:$0xff] %v341_v29   ;;  %v402_v31 = vpop.f32.mrb[4].mxu0  ;;  %381 = vst [vmem:[%s509_s3 + $0x20] sm:$0xff] %v361_v30   ;;  %v410_v32 = vpop.f32.mrb[4].mxu1 }
  0xe2   :  { %v158_v33 = vpop.f32.mrb[5].mxu0  ;;  %v190_v34 = vpop.f32.mrb[5].mxu1  ;;  %v167_v36 = vadd.f32 %v402_v31, %v289_v11  ;;  %v199_v40 = vadd.f32 %v410_v32, %v289_v11 }
  0xe3   :  { %v403_v35 = vpop.f32.mrb[6].mxu0  ;;  %v411_v38 = vpop.f32.mrb[6].mxu1  ;;  %v159_v41 = vadd.f32 %v289_v11, %v158_v33  ;;  %v191_v45 = vadd.f32 %v289_v11, %v190_v34 }
  0xe4   :  { %v170_v37 = vadd.f32 %v403_v35, %v289_v11  ;;  %v161_v39 = vpop.f32.mrb[7].mxu0  ;;  %v202_v42 = vadd.f32 %v411_v38, %v289_v11  ;;  %v193_v44 = vpop.f32.mrb[7].mxu1 }
  0xe5   :  { %v162_v43 = vadd.f32 %v289_v11, %v161_v39  ;;  %v194_v47 = vadd.f32 %v289_v11, %v193_v44 }
  0xe6   :  { %v356_v46 = vpack.c.bf16 %v170_v37, %v167_v36  ;;  %v376_v48 = vpack.c.bf16 %v202_v42, %v199_v40 }
  0xe7   :  { %v351_v49 = vpack.c.bf16 %v162_v43, %v159_v41  ;;  %v371_v50 = vpack.c.bf16 %v194_v47, %v191_v45 }
  0xe8   :  { %380 = vst [vmem:[%s509_s3 + $0x18] sm:$0xff] %v356_v46   ;;  %384 = vst [vmem:[%s509_s3 + $0x38] sm:$0xff] %v376_v48  }
  0xe9   :  { %379 = vst [vmem:[%s509_s3 + $0x10] sm:$0xff] %v351_v49   ;;  %383 = vst [vmem:[%s509_s3 + $0x30] sm:$0xff] %v371_v50  }

// kernel: _lambda_.3
= control target key start
LH: loop header
LB: loop body
LE: loop exit
PB: predicated region body
PF: predicated region fallthrough
CT: control target
= control target key end

     0   :  { %vm98_vm0 = vcmask 293888   ;;  %vm123_vm1 = vcmask 1041408   ;;  %s563_s1 = inlined_call_operand.vmem [shape: bf16[36,128], index: 1, kind: input, shape index: {}]   ;;  %s564_s0 = inlined_call_operand.vmem [shape: bf16[128,36], index: 0, kind: input, shape index: {}]   ;;  %s565_s2 = inlined_call_operand.vmem [shape: f32[1,128], index: 2, kind: input, shape index: {}]   ;;  %s566_s3 = inlined_call_operand.vmem [shape: bf16[128,128], index: 3, kind: output, shape index: {}]  }
   0x1   :  { %v464_v0 = vld [vmem:[%s563_s1] sm:$0xff]   ;;  %v465_v1 = vld [vmem:[%s563_s1 + $0x8] sm:$0xff]   ;;  %v466_v2 = vld [vmem:[%s563_s1 + $0x10] ss:$0 sps:$4 sm:$0x33]  }
   0x2   :  { %434 = vmatprep.subr.bf16.mxu0 %v464_v0  ;;  %456 = vmatprep.subr.bf16.mxu1 %v464_v0  ;;  %v467_v3 = vld [vmem:[%s564_s0] sm:$0xff]   ;;  %v125_v5 = vsel %vm123_vm1, %v466_v2, 0  ;;  %v469_v6 = vld [vmem:[%s564_s0 + $0x8] sm:$0xff]   ;;  %v471_v8 = vld [vmem:[%s564_s0 + $0x10] sm:$0xff]  }
   0x3   :  { %435 = vmatpush3.bf16.msra.mxu0 %v464_v0  ;;  %459 = vmatpush3.bf16.msra.mxu1 %v464_v0  ;;  %v468_v4 = vld [vmem:[%s564_s0 + $0x20] sm:$0xff]   ;;  %v470_v7 = vld [vmem:[%s564_s0 + $0x28] sm:$0xff]   ;;  %v472_v9 = vld [vmem:[%s564_s0 + $0x30] sm:$0xff]  }
   0x4   :  { %436 = vmatprep.subr.bf16.mxu0 %v465_v1  ;;  %457 = vmatprep.subr.bf16.mxu1 %v465_v1  ;;  %v473_v10 = vld [vmem:[%s564_s0 + $0x18] sm:$0xff]   ;;  %v324_v12 = vld [vmem:[%s565_s2] ss:$0 sm:$0xff] }
   0x5   :  { %440 = vmatprep.mubr.msk.bf16.mxu0 %vm98_vm0, %v467_v3  ;;  %448 = vmatprep.mubr.msk.bf16.mxu1 %vm98_vm0, %v468_v4  ;;  %v474_v11 = vld [vmem:[%s564_s0 + $0x38] sm:$0xff]  }
   0x7   :  { %437 = vmatpush3.bf16.msra.mxu0 %v465_v1  ;;  %460 = vmatpush3.bf16.msra.mxu1 %v465_v1 }
   0x8   :  { %462 = vmatprep.subr.msk.bf16.mxu0 %vm123_vm1, %v466_v2  ;;  %463 = vmatprep.subr.msk.bf16.mxu1 %vm123_vm1, %v466_v2 }
   0xb   :  { %439 = vmatpush3.bf16.msra.mxu0 %v125_v5  ;;  %461 = vmatpush3.bf16.msra.mxu1 %v125_v5 }
   0xe   :  { %441 = vmatmul.mubr.msk.bf16.vlgmr.msra.gmra.mrb[0].mxu0 %vm98_vm0, %v469_v6  ;;  %449 = vmatmul.mubr.msk.bf16.vlgmr.msra.gmra.mrb[0].mxu1 %vm98_vm0, %v470_v7 }
   0xf   :  { %444 = vmatprep.mubr.msk.bf16.mxu0 %vm98_vm0, %v471_v8  ;;  %452 = vmatprep.mubr.msk.bf16.mxu1 %vm98_vm0, %v472_v9 }
  0x16   :  { %445 = vmatmul.mubr.msk.bf16.gmra.mrb[4].mxu0 %vm98_vm0, %v473_v10  ;;  %453 = vmatmul.mubr.msk.bf16.gmra.mrb[4].mxu1 %vm98_vm0, %v474_v11 }
  0xe1   :  { %v442_v13 = vpop.f32.mrb[0].mxu0  ;;  %v450_v14 = vpop.f32.mrb[0].mxu1 }
  0xe2   :  { %v170_v15 = vadd.f32 %v442_v13, %v324_v12  ;;  %v202_v16 = vadd.f32 %v450_v14, %v324_v12  ;;  %v161_v17 = vpop.f32.mrb[1].mxu0  ;;  %v193_v18 = vpop.f32.mrb[1].mxu1 }
  0xe3   :  { %v162_v19 = vadd.f32 %v324_v12, %v161_v17  ;;  %v194_v20 = vadd.f32 %v324_v12, %v193_v18  ;;  %v443_v21 = vpop.f32.mrb[2].mxu0  ;;  %v451_v22 = vpop.f32.mrb[2].mxu1 }
  0xe4   :  { %v173_v23 = vadd.f32 %v443_v21, %v324_v12  ;;  %v205_v24 = vadd.f32 %v451_v22, %v324_v12  ;;  %v164_v25 = vpop.f32.mrb[3].mxu0  ;;  %v196_v26 = vpop.f32.mrb[3].mxu1  ;;  %v226_v29 = vmax.f32 %v170_v15, 0.0  ;;  %v234_v30 = vmax.f32 %v202_v16, 0.0 }
  0xe5   :  { %v165_v27 = vadd.f32 %v324_v12, %v164_v25  ;;  %v197_v28 = vadd.f32 %v324_v12, %v196_v26  ;;  %v224_v33 = vmax.f32 %v162_v19, 0.0  ;;  %v232_v34 = vmax.f32 %v194_v20, 0.0 }
  0xe6   :  { %v227_v31 = vmax.f32 %v173_v23, 0.0  ;;  %v235_v32 = vmax.f32 %v205_v24, 0.0 }
  0xe7   :  { %v225_v35 = vmax.f32 %v165_v27, 0.0  ;;  %v233_v36 = vmax.f32 %v197_v28, 0.0 }
  0xe8   :  { %v384_v37 = vpack.c.bf16 %v227_v31, %v226_v29  ;;  %v404_v38 = vpack.c.bf16 %v235_v32, %v234_v30 }
  0xe9   :  { %v379_v39 = vpack.c.bf16 %v225_v35, %v224_v33  ;;  %v399_v40 = vpack.c.bf16 %v233_v36, %v232_v34  ;;  %v446_v41 = vpop.f32.mrb[4].mxu0  ;;  %v454_v42 = vpop.f32.mrb[4].mxu1 }
  0xea   :  { %416 = vst [vmem:[%s566_s3 + $0x8] sm:$0xff] %v384_v37   ;;  %420 = vst [vmem:[%s566_s3 + $0x28] sm:$0xff] %v404_v38   ;;  %v186_v43 = vadd.f32 %v446_v41, %v324_v12  ;;  %v218_v44 = vadd.f32 %v454_v42, %v324_v12  ;;  %v177_v45 = vpop.f32.mrb[5].mxu0  ;;  %v209_v46 = vpop.f32.mrb[5].mxu1 }
  0xeb   :  { %380 = vst [vmem:[%s566_s3] sm:$0xff] %v379_v39   ;;  %419 = vst [vmem:[%s566_s3 + $0x20] sm:$0xff] %v399_v40   ;;  %v178_v47 = vadd.f32 %v324_v12, %v177_v45  ;;  %v210_v48 = vadd.f32 %v324_v12, %v209_v46  ;;  %v447_v49 = vpop.f32.mrb[6].mxu0  ;;  %v455_v50 = vpop.f32.mrb[6].mxu1 }
  0xec   :  { %v189_v51 = vadd.f32 %v447_v49, %v324_v12  ;;  %v221_v52 = vadd.f32 %v455_v50, %v324_v12  ;;  %v180_v53 = vpop.f32.mrb[7].mxu0  ;;  %v212_v54 = vpop.f32.mrb[7].mxu1  ;;  %v230_v57 = vmax.f32 %v186_v43, 0.0  ;;  %v238_v58 = vmax.f32 %v218_v44, 0.0 }
  0xed   :  { %v181_v55 = vadd.f32 %v324_v12, %v180_v53  ;;  %v213_v56 = vadd.f32 %v324_v12, %v212_v54  ;;  %v228_v61 = vmax.f32 %v178_v47, 0.0  ;;  %v236_v62 = vmax.f32 %v210_v48, 0.0 }
  0xee   :  { %v231_v59 = vmax.f32 %v189_v51, 0.0  ;;  %v239_v60 = vmax.f32 %v221_v52, 0.0 }
  0xef   :  { %v229_v63 = vmax.f32 %v181_v55, 0.0  ;;  %v237_v0 = vmax.f32 %v213_v56, 0.0 }
  0xf0   :  { %v394_v1 = vpack.c.bf16 %v231_v59, %v230_v57  ;;  %v414_v2 = vpack.c.bf16 %v239_v60, %v238_v58 }
  0xf1   :  { %v389_v3 = vpack.c.bf16 %v229_v63, %v228_v61  ;;  %v409_v4 = vpack.c.bf16 %v237_v0, %v236_v62 }
  0xf2   :  { %418 = vst [vmem:[%s566_s3 + $0x18] sm:$0xff] %v394_v1   ;;  %422 = vst [vmem:[%s566_s3 + $0x38] sm:$0xff] %v414_v2  }
  0xf3   :  { %417 = vst [vmem:[%s566_s3 + $0x10] sm:$0xff] %v389_v3   ;;  %421 = vst [vmem:[%s566_s3 + $0x30] sm:$0xff] %v409_v4  }

// kernel: _lambda_.5
= control target key start
LH: loop header
LB: loop body
LE: loop exit
PB: predicated region body
PF: predicated region fallthrough
CT: control target
= control target key end

     0   :  { %vm117_vm0 = vcmask 588800   ;;  %vm142_vm1 = vcmask 1043456   ;;  %s617_s1 = inlined_call_operand.vmem [shape: bf16[72,128], index: 1, kind: input, shape index: {}]   ;;  %s618_s0 = inlined_call_operand.vmem [shape: bf16[128,72], index: 0, kind: input, shape index: {}]   ;;  %s619_s3 = inlined_call_operand.vmem [shape: bf16[128,128], index: 3, kind: input, shape index: {}]   ;;  %s620_s2 = inlined_call_operand.vmem [shape: f32[1,128], index: 2, kind: input, shape index: {}]   ;;  %s621_s4 = inlined_call_operand.vmem [shape: f32[128,128], index: 4, kind: output, shape index: {}]  }
   0x1   :  { %v439_v0 = vld [vmem:[%s617_s1] sm:$0xff]   ;;  %v440_v1 = vld [vmem:[%s617_s1 + $0x8] sm:$0xff]   ;;  %v441_v2 = vld [vmem:[%s617_s1 + $0x10] sm:$0xff]  }
   0x2   :  { %401 = vmatprep.subr.bf16.mxu0 %v439_v0  ;;  %427 = vmatprep.subr.bf16.mxu1 %v439_v0  ;;  %v444_v3 = vld [vmem:[%s618_s0] sm:$0xff]   ;;  %v442_v5 = vld [vmem:[%s617_s1 + $0x18] sm:$0xff]   ;;  %v446_v8 = vld [vmem:[%s618_s0 + $0x8] sm:$0xff]  }
   0x3   :  { %402 = vmatpush3.bf16.msra.mxu0 %v439_v0  ;;  %432 = vmatpush3.bf16.msra.mxu1 %v439_v0  ;;  %v445_v4 = vld [vmem:[%s618_s0 + $0x20] sm:$0xff]   ;;  %v447_v9 = vld [vmem:[%s618_s0 + $0x28] sm:$0xff]   ;;  %v448_v10 = vld [vmem:[%s618_s0 + $0x10] sm:$0xff]  }
   0x4   :  { %403 = vmatprep.subr.bf16.mxu0 %v440_v1  ;;  %428 = vmatprep.subr.bf16.mxu1 %v440_v1  ;;  %v443_v6 = vld [vmem:[%s617_s1 + $0x20] ss:$0 sps:$4 sm:$0xff]   ;;  %v449_v11 = vld [vmem:[%s618_s0 + $0x30] sm:$0xff]   ;;  %v450_v12 = vld [vmem:[%s618_s0 + $0x18] sm:$0xff]  }
   0x5   :  { %411 = vmatprep.mubr.msk.bf16.mxu0 %vm117_vm0, %v444_v3  ;;  %419 = vmatprep.mubr.msk.bf16.mxu1 %vm117_vm0, %v445_v4  ;;  %v144_v7 = vsel %vm142_vm1, %v443_v6, 0  ;;  %v451_v13 = vld [vmem:[%s618_s0 + $0x38] sm:$0xff]   ;;  %v381_v14 = vld [vmem:[%s619_s3 + $0x8] sm:$0xff]   ;;  %v350_v16 = vld [vmem:[%s619_s3] sm:$0xff]  }
   0x6   :  { %v385_v15 = vld [vmem:[%s619_s3 + $0x28] sm:$0xff]   ;;  %v384_v17 = vld [vmem:[%s619_s3 + $0x20] sm:$0xff]   ;;  %v355_v19 = vunpack.c.l.bf16 %v381_v14  ;;  %v351_v23 = vunpack.c.l.bf16 %v350_v16  ;;  %v356_v29 = vunpack.c.h.bf16 %v381_v14  ;;  %v352_v35 = vunpack.c.h.bf16 %v350_v16  ;;  %v383_v47 = vld [vmem:[%s619_s3 + $0x18] sm:$0xff]  }
   0x7   :  { %404 = vmatpush3.bf16.msra.mxu0 %v440_v1  ;;  %433 = vmatpush3.bf16.msra.mxu1 %v440_v1  ;;  %v539_v18 = vld [vmem:[%s620_s2] ss:$0 sm:$0xff]  ;;  %v371_v20 = vunpack.c.l.bf16 %v385_v15  ;;  %v367_v24 = vunpack.c.l.bf16 %v384_v17  ;;  %v372_v30 = vunpack.c.h.bf16 %v385_v15  ;;  %v368_v36 = vunpack.c.h.bf16 %v384_v17  ;;  %v387_v48 = vld [vmem:[%s619_s3 + $0x38] sm:$0xff]   ;;  %v382_v53 = vld [vmem:[%s619_s3 + $0x10] sm:$0xff]  }
   0x8   :  { %405 = vmatprep.subr.bf16.mxu0 %v441_v2  ;;  %429 = vmatprep.subr.bf16.mxu1 %v441_v2  ;;  %v386_v54 = vld [vmem:[%s619_s3 + $0x30] sm:$0xff]   ;;  %v363_v61 = vunpack.c.l.bf16 %v383_v47  ;;  %v379_v62 = vunpack.c.l.bf16 %v387_v48  ;;  %v359_v3 = vunpack.c.l.bf16 %v382_v53  ;;  %v360_v15 = vunpack.c.h.bf16 %v382_v53 }
   0x9   :  { %v375_v4 = vunpack.c.l.bf16 %v386_v54  ;;  %v376_v16 = vunpack.c.h.bf16 %v386_v54 }
   0xb   :  { %406 = vmatpush3.bf16.msra.mxu0 %v441_v2  ;;  %434 = vmatpush3.bf16.msra.mxu1 %v441_v2 }
   0xc   :  { %407 = vmatprep.subr.bf16.mxu0 %v442_v5  ;;  %430 = vmatprep.subr.bf16.mxu1 %v442_v5 }
   0xf   :  { %408 = vmatpush3.bf16.msra.mxu0 %v442_v5  ;;  %435 = vmatpush3.bf16.msra.mxu1 %v442_v5 }
  0x10   :  { %437 = vmatprep.subr.msk.bf16.mxu0 %vm142_vm1, %v443_v6  ;;  %438 = vmatprep.subr.msk.bf16.mxu1 %vm142_vm1, %v443_v6 }
  0x13   :  { %410 = vmatpush3.bf16.msra.mxu0 %v144_v7  ;;  %436 = vmatpush3.bf16.msra.mxu1 %v144_v7 }
  0x16   :  { %412 = vmatmul.mubr.msk.bf16.vlgmr.msra.gmra.mrb[0].mxu0 %vm117_vm0, %v446_v8  ;;  %420 = vmatmul.mubr.msk.bf16.vlgmr.msra.gmra.mrb[0].mxu1 %vm117_vm0, %v447_v9  ;;  %v364_v9 = vunpack.c.h.bf16 %v383_v47 }
  0x17   :  { %415 = vmatprep.mubr.msk.bf16.mxu0 %vm117_vm0, %v448_v10  ;;  %423 = vmatprep.mubr.msk.bf16.mxu1 %vm117_vm0, %v449_v11  ;;  %v380_v10 = vunpack.c.h.bf16 %v387_v48 }
  0x1e   :  { %416 = vmatmul.mubr.msk.bf16.gmra.mrb[4].mxu0 %vm117_vm0, %v450_v12  ;;  %424 = vmatmul.mubr.msk.bf16.gmra.mrb[4].mxu1 %vm117_vm0, %v451_v13 }
  0xe9   :  { %v413_v21 = vpop.f32.mrb[0].mxu0  ;;  %v421_v22 = vpop.f32.mrb[0].mxu1 }
  0xea   :  { %v189_v25 = vadd.f32 %v413_v21, %v539_v18  ;;  %v221_v26 = vadd.f32 %v421_v22, %v539_v18  ;;  %v180_v27 = vpop.f32.mrb[1].mxu0  ;;  %v212_v28 = vpop.f32.mrb[1].mxu1 }
  0xeb   :  { %v181_v31 = vadd.f32 %v539_v18, %v180_v27  ;;  %v213_v32 = vadd.f32 %v539_v18, %v212_v28  ;;  %v414_v33 = vpop.f32.mrb[2].mxu0  ;;  %v422_v34 = vpop.f32.mrb[2].mxu1 }
  0xec   :  { %v277_v37 = vadd.f32 %v355_v19, %v189_v25  ;;  %v285_v38 = vadd.f32 %v371_v20, %v221_v26  ;;  %v192_v39 = vadd.f32 %v414_v33, %v539_v18  ;;  %v224_v40 = vadd.f32 %v422_v34, %v539_v18  ;;  %v183_v41 = vpop.f32.mrb[3].mxu0  ;;  %v215_v42 = vpop.f32.mrb[3].mxu1 }
  0xed   :  { %v275_v43 = vadd.f32 %v351_v23, %v181_v31  ;;  %v283_v44 = vadd.f32 %v367_v24, %v213_v32  ;;  %v184_v45 = vadd.f32 %v539_v18, %v183_v41  ;;  %v216_v46 = vadd.f32 %v539_v18, %v215_v42 }
  0xee   :  { %v293_v49 = vmax.f32 %v277_v37, 0.0  ;;  %v301_v50 = vmax.f32 %v285_v38, 0.0  ;;  %v278_v51 = vadd.f32 %v356_v29, %v192_v39  ;;  %v286_v52 = vadd.f32 %v372_v30, %v224_v40 }
  0xef   :  { %v291_v55 = vmax.f32 %v275_v43, 0.0  ;;  %v299_v56 = vmax.f32 %v283_v44, 0.0  ;;  %v276_v57 = vadd.f32 %v352_v35, %v184_v45  ;;  %v284_v58 = vadd.f32 %v368_v36, %v216_v46 }
  0xf0   :  { %309 = vst [vmem:[%s621_s4 + $0x10] sm:$0xff] %v293_v49  ;;  %317 = vst [vmem:[%s621_s4 + $0x50] sm:$0xff] %v301_v50  ;;  %v294_v59 = vmax.f32 %v278_v51, 0.0  ;;  %v302_v60 = vmax.f32 %v286_v52, 0.0 }
  0xf1   :  { %307 = vst [vmem:[%s621_s4] sm:$0xff] %v291_v55  ;;  %315 = vst [vmem:[%s621_s4 + $0x40] sm:$0xff] %v299_v56  ;;  %v292_v63 = vmax.f32 %v276_v57, 0.0  ;;  %v300_v0 = vmax.f32 %v284_v58, 0.0  ;;  %v417_v1 = vpop.f32.mrb[4].mxu0  ;;  %v425_v2 = vpop.f32.mrb[4].mxu1 }
  0xf2   :  { %310 = vst [vmem:[%s621_s4 + $0x18] sm:$0xff] %v294_v59  ;;  %318 = vst [vmem:[%s621_s4 + $0x58] sm:$0xff] %v302_v60  ;;  %v205_v5 = vadd.f32 %v417_v1, %v539_v18  ;;  %v237_v6 = vadd.f32 %v425_v2, %v539_v18  ;;  %v196_v7 = vpop.f32.mrb[5].mxu0  ;;  %v228_v8 = vpop.f32.mrb[5].mxu1 }
  0xf3   :  { %308 = vst [vmem:[%s621_s4 + $0x8] sm:$0xff] %v292_v63  ;;  %316 = vst [vmem:[%s621_s4 + $0x48] sm:$0xff] %v300_v0  ;;  %v197_v11 = vadd.f32 %v539_v18, %v196_v7  ;;  %v229_v12 = vadd.f32 %v539_v18, %v228_v8  ;;  %v418_v13 = vpop.f32.mrb[6].mxu0  ;;  %v426_v14 = vpop.f32.mrb[6].mxu1 }
  0xf4   :  { %v281_v17 = vadd.f32 %v363_v61, %v205_v5  ;;  %v289_v19 = vadd.f32 %v379_v62, %v237_v6  ;;  %v208_v20 = vadd.f32 %v418_v13, %v539_v18  ;;  %v240_v21 = vadd.f32 %v426_v14, %v539_v18  ;;  %v199_v22 = vpop.f32.mrb[7].mxu0  ;;  %v231_v23 = vpop.f32.mrb[7].mxu1 }
  0xf5   :  { %v279_v24 = vadd.f32 %v359_v3, %v197_v11  ;;  %v287_v25 = vadd.f32 %v375_v4, %v229_v12  ;;  %v200_v26 = vadd.f32 %v539_v18, %v199_v22  ;;  %v232_v27 = vadd.f32 %v539_v18, %v231_v23 }
  0xf6   :  { %v297_v28 = vmax.f32 %v281_v17, 0.0  ;;  %v305_v29 = vmax.f32 %v289_v19, 0.0  ;;  %v282_v30 = vadd.f32 %v364_v9, %v208_v20  ;;  %v290_v31 = vadd.f32 %v380_v10, %v240_v21 }
  0xf7   :  { %v295_v32 = vmax.f32 %v279_v24, 0.0  ;;  %v303_v33 = vmax.f32 %v287_v25, 0.0  ;;  %v280_v34 = vadd.f32 %v360_v15, %v200_v26  ;;  %v288_v35 = vadd.f32 %v376_v16, %v232_v27 }
  0xf8   :  { %313 = vst [vmem:[%s621_s4 + $0x30] sm:$0xff] %v297_v28  ;;  %321 = vst [vmem:[%s621_s4 + $0x70] sm:$0xff] %v305_v29  ;;  %v298_v36 = vmax.f32 %v282_v30, 0.0  ;;  %v306_v37 = vmax.f32 %v290_v31, 0.0 }
  0xf9   :  { %311 = vst [vmem:[%s621_s4 + $0x20] sm:$0xff] %v295_v32  ;;  %319 = vst [vmem:[%s621_s4 + $0x60] sm:$0xff] %v303_v33  ;;  %v296_v18 = vmax.f32 %v280_v34, 0.0  ;;  %v304_v38 = vmax.f32 %v288_v35, 0.0 }
  0xfa   :  { %314 = vst [vmem:[%s621_s4 + $0x38] sm:$0xff] %v298_v36  ;;  %322 = vst [vmem:[%s621_s4 + $0x78] sm:$0xff] %v306_v37 }
  0xfb   :  { %312 = vst [vmem:[%s621_s4 + $0x28] sm:$0xff] %v296_v18  ;;  %320 = vst [vmem:[%s621_s4 + $0x68] sm:$0xff] %v304_v38 }

</bundles_post_ra>
